<compile_context>
chip_gen: v6e
topology: v6e:2x2x1
jax: 0.10.0
libtpu: 0.0.40
codegen_flags: <defaults>
</compile_context>

<pallas_src>
import jax
import jax.numpy as jnp
from jax.experimental import pallas as pl
from jax.experimental.pallas import tpu as pltpu


def torso_angle_kernel(zs_ref, w_ref, b_ref, out_ref):
    # Folded phi_inv + torso read-out: one streaming MXU matvec (lane-packed),
    # f32 accumulation, scalar bias read from SMEM (rides in VALU slack).
    h = jnp.dot(zs_ref[...], w_ref[...], preferred_element_type=jnp.float32)
    out_ref[...] = (h + b_ref[0]).astype(out_ref.dtype)


def torso_angle_forward(zs, w_phiT, b_phi, w_tors, zdots=None, *,
                        tb=8192,
                        stream_dtype=jnp.float32,
                        min_rows_for_pallas=1024,
                        vmem_limit_bytes=48 * 1024 * 1024,
                        buffer_count=None):
    """h = torso_angle(phi_inv(zs)); zdots is unused by the forward pass."""
    del zdots  # torso angle depends on configuration only
    B, nz = zs.shape

    # ---- offline algebraic folding (host/XLA side, once per call) ----
    #   w_eff = W_phi^T @ w_tors^T  (nz, 1),  b_eff = sum(b_phi * w_tors)  scalar
    w_eff = (w_phiT @ w_tors.reshape(-1, 1)).astype(jnp.float32)                 # (nz, 1)
    b_eff = jnp.sum(b_phi.reshape(-1) * w_tors.reshape(-1)).astype(jnp.float32)  # scalar

    if B < min_rows_for_pallas:
        # Tiny batch: launch + pipeline prologue dominates -> plain XLA matvec.
        return (zs.astype(jnp.float32) @ w_eff + b_eff).astype(jnp.float32)

    # ---- lane packing: (B, nz) -> (B/pack, pack*nz) so K fills all 128 lanes ----
    pack = 128 // nz if (0 < nz <= 128 and 128 % nz == 0) else 1
    B_pad = ((B + pack - 1) // pack) * pack
    zs_f = zs.astype(jnp.float32)
    if B_pad != B:
        zs_f = jnp.pad(zs_f, ((0, B_pad - B), (0, 0)))
    BP = B_pad // pack
    K = pack * nz
    zs_p = zs_f.reshape(BP, K).astype(stream_dtype)                 # contiguous reshape (free)
    # Block-diagonal effective weight: out[r, q] = zs[r*pack + q] @ w_eff
    w_blk = jnp.kron(jnp.eye(pack, dtype=jnp.float32), w_eff).astype(stream_dtype)  # (K, pack)
    b_vec = b_eff.reshape(1)                                        # scalar bias -> SMEM

    # ---- batch tiling (packed rows); rounded to the (8, ·) sublane constraint ----
    tbp = max(8, ((tb // pack) // 8) * 8)
    if tbp >= BP:
        tbp = BP                         # full-dim block is always legal
    grid = (pl.cdiv(BP, tbp),)

    zs_spec_kwargs = {}
    if buffer_count is not None:         # deeper pipelining if DMA is exposed
        zs_spec_kwargs["pipeline_mode"] = pl.Buffered(buffer_count)

    out_p = pl.pallas_call(
        torso_angle_kernel,
        out_shape=jax.ShapeDtypeStruct((BP, pack), jnp.float32),
        grid=grid,
        in_specs=[
            pl.BlockSpec((tbp, K), lambda i: (i, 0), **zs_spec_kwargs),   # streamed zs tiles
            pl.BlockSpec((K, pack), lambda i: (0, 0)),                    # resident packed weight
            pl.BlockSpec(memory_space=pltpu.MemorySpace.SMEM),            # scalar bias
        ],
        out_specs=pl.BlockSpec((tbp, pack), lambda i: (i, 0)),
        compiler_params=pltpu.CompilerParams(
            dimension_semantics=("parallel",),   # independent batch tiles (2-TC win on v7x)
            vmem_limit_bytes=vmem_limit_bytes,   # 48 MiB: safe on v7x's 64 MiB VMEM
        ),
    )(zs_p, w_blk, b_vec)

    # (BP, pack) -> (B_pad, 1) is a contiguous reshape; drop any padded rows.
    return out_p.reshape(B_pad, 1)[:B]


if __name__ == "__main__":
    # Small shapes, but sized so the demo exercises the packed multi-tile grid
    # (pack=4, tb=512 -> packed tile 128 rows, grid of 4 steps).
    B, nz, nq = 2048, 32, 16

    key = jax.random.PRNGKey(0)
    k_zs, k_zd, k_w, k_b, k_t = jax.random.split(key, 5)

    zs = jax.random.normal(k_zs, (B, nz), dtype=jnp.float32)
    zdots = jax.random.normal(k_zd, (B, nz), dtype=jnp.float32)   # unused by forward
    # Deterministic synthetic "parameters" of phi_inv and the torso-angle read-out.
    w_phiT = jax.random.normal(k_w, (nz, nq), dtype=jnp.float32) / jnp.sqrt(jnp.float32(nz))
    b_phi = jax.random.normal(k_b, (1, nq), dtype=jnp.float32) * 0.1
    w_tors = jax.random.normal(k_t, (1, nq), dtype=jnp.float32)

    # Pure-JAX reference of the original (unfolded) semantics.
    ref = jnp.sum((zs @ w_phiT + b_phi) * w_tors, axis=-1, keepdims=True)

    # f32-streamed Pallas path.
    out = torso_angle_forward(zs, w_phiT, b_phi, w_tors, zdots=zdots, tb=512)
    out = jax.block_until_ready(out)
    assert out.shape == (B, 1)
    assert jnp.allclose(out, ref, atol=1e-4, rtol=1e-4)

    # bf16-streamed variant (halved HBM traffic, f32 accumulate) at bf16 tolerance.
    out_bf16 = torso_angle_forward(zs, w_phiT, b_phi, w_tors, zdots=zdots, tb=512,
                                   stream_dtype=jnp.bfloat16)
    out_bf16 = jax.block_until_ready(out_bf16)
    assert jnp.allclose(out_bf16, ref, atol=1.5e-1, rtol=5e-2)

    # Tiny-batch fallback path (no standalone pallas_call below the threshold).
    out_small = torso_angle_forward(zs[:8], w_phiT, b_phi, w_tors)
    out_small = jax.block_until_ready(out_small)
    assert jnp.allclose(out_small, ref[:8], atol=1e-4, rtol=1e-4)

    print("KERNEL_OK")
</pallas_src>

<mosaic_0001>
module attributes {stable_mosaic.version = 11 : i64} {
  func.func @torso_angle_kernel(%arg0: i32, %arg1: memref<128x128xf32, #tpu.memory_space<vmem>>, %arg2: memref<128x4xf32, #tpu.memory_space<vmem>>, %arg3: memref<1xf32, #tpu.memory_space<smem>>, %arg4: memref<128x4xf32, #tpu.memory_space<vmem>>) attributes {dimension_semantics = [#tpu.dimension_semantics<parallel>], iteration_bounds = array<i64: 4>, scalar_prefetch = 0 : i64, scratch_operands = 0 : i64, tpu.core_type = #tpu.core_type<tc>, window_params = [{transform_indices = @transform_0, window_bounds = array<i64: 128, 128>}, {pipeline_mode = #tpu.pipeline_mode<synchronous>, transform_indices = @transform_1, window_bounds = array<i64: 128, 4>}, {transform_indices = @transform_2, window_bounds = array<i64: 1>}, {transform_indices = @transform_3, window_bounds = array<i64: 128, 4>}]} {
    %c0 = arith.constant 0 : index
    %c0_0 = arith.constant 0 : index
    %0 = vector.load %arg1[%c0, %c0_0] : memref<128x128xf32, #tpu.memory_space<vmem>>, vector<128x128xf32>
    %c0_1 = arith.constant 0 : index
    %c0_2 = arith.constant 0 : index
    %1 = vector.load %arg2[%c0_1, %c0_2] : memref<128x4xf32, #tpu.memory_space<vmem>>, vector<128x4xf32>
    %cst = arith.constant dense<0.000000e+00> : vector<128x4xf32>
    %2 = tpu.matmul %0, %1, %cst {dimension_numbers = #tpu.dot_dimension_numbers<[1], [0], [0], [1], [0, 0, 1, 1], [], []>} : vector<128x128xf32>, vector<128x4xf32>, vector<128x4xf32> -> vector<128x4xf32>
    %c0_3 = arith.constant 0 : index
    %3 = memref.load %arg3[%c0_3] : memref<1xf32, #tpu.memory_space<smem>>
    %4 = vector.broadcast %3 : f32 to vector<128x4xf32>
    %5 = arith.addf %2, %4 : vector<128x4xf32>
    %c0_4 = arith.constant 0 : index
    %c0_5 = arith.constant 0 : index
    %6 = vector.load %arg4[%c0_4, %c0_5] : memref<128x4xf32, #tpu.memory_space<vmem>>, vector<128x4xf32>
    tpu.vector_store %arg4[%c0_4, %c0_5], %5 {strides = array<i32>} : memref<128x4xf32, #tpu.memory_space<vmem>>, vector<128x4xf32>,
    return
  }
  func.func @transform_0(%arg0: i32) -> (i32, i32) {
    %c0_i32 = arith.constant 0 : i32
    %c0_i32_0 = arith.constant 0 : i32
    return %arg0, %c0_i32 : i32, i32
  }
  func.func @transform_1(%arg0: i32) -> (i32, i32) {
    %c0_i32 = arith.constant 0 : i32
    %c0_i32_0 = arith.constant 0 : i32
    %c0_i32_1 = arith.constant 0 : i32
    return %c0_i32, %c0_i32_0 : i32, i32
  }
  func.func @transform_2(%arg0: i32) -> i32 {
    %c0_i32 = arith.constant 0 : i32
    %c0_i32_0 = arith.constant 0 : i32
    return %c0_i32 : i32
  }
  func.func @transform_3(%arg0: i32) -> (i32, i32) {
    %c0_i32 = arith.constant 0 : i32
    %c0_i32_0 = arith.constant 0 : i32
    return %arg0, %c0_i32 : i32, i32
  }
}

</mosaic_0001>

<bundles_post_ra>
// kernel: tpu_custom_call.1
= control target key start
LH: loop header
LB: loop body
LE: loop exit
PB: predicated region body
PF: predicated region fallthrough
CT: control target
= control target key end

     0   :  { %s922_s0 = inlined_call_operand.hbm [shape: f32[512,128], index: 0, kind: input, shape index: {}]   ;;  %s923_s1 = inlined_call_operand.vmem [shape: f32[128,4], index: 1, kind: input, shape index: {}]   ;;  %s924_s2 = inlined_call_operand.<no memory space> [shape: f32[1], index: 2, kind: input, shape index: {}]   ;;  %s925_s3 = inlined_call_operand.vmem [shape: f32[512,4], index: 3, kind: output, shape index: {}]  }
   0x1   :  { %8 = sst [smem:[#allocation2]] %s924_s2 }
   0x2   :  { %9 = vsyncpa [#allocation4], 0 }
   0x3   :  { %11 = vsyncpa [#allocation4 + $0x1], 0  ;;  %s722_s14 = smov 0   ;;  %s724_s15 = smov 0  }
   0x4   :  { %s726_s16 = smov 0   ;;  %s728_s17 = smov 0  }
   0x5 LB: > { %s457_s2 = sadd.s32 4294967295, %s694_s17   ;;  %s742_s18 = sadd.s32 1, %s694_s17   ;;  %s694_s17 = sphi %s728_s17, %s934_s17   ;;  %s690_s16 = sphi %s726_s16, %s933_s16   ;;  %s686_s15 = sphi %s724_s15, %s932_s15   ;;  %s682_s14 = sphi %s722_s14, %s931_s14  }
   0x6   : > { %s21_s19 = ssub.s32 %s694_s17, %s742_s18  ;;  %s24_s20 = sadd.s32 1, %s690_s16 }
   0x7   : > { %p22_p0 = scmp.eq.s32.totalorder %s21_s19, 0  ;;  %p31_p1 = scmp.ne.s32.totalorder %s690_s16, %s686_s15 }
   0x8   : > { %p32_p2 = scmp.eq.s32.totalorder %s694_s17, 0  ;;  %p37_p3 = scmp.ne.s32.totalorder %s686_s15, %s682_s14 }
   0x9   : > { %s752_s21 = scalar_select %p22_p0, %s690_s16, %s24_s20  }
   0xa   : > { %p33_p4 = por %p32_p2, %p31_p1  ;;  %p38_p5 = scmp.eq.s32.totalorder %s457_s2, 0 }
   0xb   : > { %p597_p6 = scmp.lt.s32.totalorder %s694_s17, 4  ;;  %s135_s23 = sand.u32 1, %s690_s16  }
   0xc   : > { %p757_p7 = por %p38_p5, %p37_p3  ;;  %s461_s24 = sshll.u32 %s135_s23, 7 }
   0xd   : > { %s470_s25 = sshll.u32 %s694_s17, 11  ;;  %s139_s29 = scalar_lea.vmem [#allocation3], %s461_s24 }
   0xe   : > { %s927_s22 = scalar_select %p757_p7, 1, 0 }
   0xf   : > { %s766_s28 = scalar_lea.hbm %s922_s0, %s470_s25  ;;  %s146_s30 = sshll.u32 %s139_s29, 4  ;;  %s768_s30 = int_to_ptr.vmem [resolvable:$true] %s146_s30 }
  0x10   : > { %p770_p8 = pnand %p597_p6, %p33_p4  ;;  %s775_s5 = scalar_lea.sflag [#allocation4], %s135_s23 }
  0x11   : > { %s632_s6 = scalar_lea.hbm %s766_s28, 2048  ;;  %s637_s9 = scalar_lea.hbm %s922_s0, 8192 }
  0x12   : > { %p633_p10 = scmp.ne.s32.totalorder %s766_s28, %s632_s6  ;;  %p634_p11 = pneg %p770_p8 }
  0x13   : > { %p638_p0 = scmp.lt.s32.totalorder %s766_s28, %s922_s0  ;;  %p639_p1 = scmp.lt.s32.totalorder %s637_s9, %s632_s6 }
  0x14   : > { %p635_p12 = pnand %p634_p11, %p633_p10 }
  0x15   : > { %p640_p2 = por %p639_p1, %p638_p0 }
  0x16   : > { %p636_p13 = pneg %p635_p12 }
  0x18   : > { %p641_p3 = pnand %p640_p2, %p636_p13 }
  0x1a   : > { %644 = shalt.err (!%p641_p3)
}
  0x1b   : > { %s645_s12 = scalar_lea.vmem %s768_s30, 2048  ;;  %s696_s13 = smov [#allocation3]  }
  0x1c   : > { %p646_p4 = scmp.ne.s32.totalorder %s768_s30, %s645_s12  ;;  %s650_s14 = sshll.u32 %s696_s13, 4  ;;  %s651_s14 = int_to_ptr.vmem [resolvable:$false] %s650_s14 }
  0x1d   : > { %s652_s19 = scalar_lea.vmem %s651_s14, 4096  ;;  %p653_p10 = scmp.lt.s32.totalorder %s768_s30, %s651_s14 }
  0x1e   : > { %p648_p5 = pnand %p646_p4, %p634_p11  ;;  %p654_p12 = scmp.lt.s32.totalorder %s652_s19, %s645_s12 }
  0x20   : > { %p649_p6 = pneg %p648_p5  ;;  %p655_p9 = por %p654_p12, %p653_p10 }
  0x22   : > { %p656_p7 = pnand %p655_p9, %p649_p6 }
  0x24   : > { %659 = shalt.err (!%p656_p7)
}
  0x25   : > { %s697_s20 = smov 128   ;;  %s698_s23 = smov 8  }
  0x26   : > { %596 = dma.hbm_to_vmem [thread:$0]  (!%p770_p8), %s766_s28, 2048, %s768_s30, %s775_s5, %s697_s20, %s697_s20, %s698_s23  }
  0x27   : > { %p154_p11 = scmp.lt.s32.totalorder %s694_s17, 5  ;;  %p929_p13 = scmp.ge.s32.totalorder %s694_s17, 1 }
  0x29   : > { %p155_p0 = pnand %p929_p13, %p154_p11 }
  0x2a   : > { %s160_s24 = sand.u32 (!%p155_p0), 1, %s686_s15   ;;  %p930_p7 = scmp.ne.s32.totalorder (!%p155_p0), %s927_s22, 0 }
  0x2b   : > { %158 = sbr.rel (%p155_p0) target bundleno = 293 (0x125), region = 32  ;;  %s465_s25 = sshll.u32 (!%p155_p0), %s160_s24, 7 }
  0x2c   : > { %s161_s26 = scalar_lea.sflag (!%p155_p0), [#allocation4], %s160_s24  ;;  %s800_s27 = scalar_lea.vmem (!%p155_p0), [#allocation3], %s465_s25 }
  0x30   : > { %677 = dma.done.wait (%p930_p7), %s161_s26, 2048  }
  0x31   : > { %679 = vsyncadd (%p930_p7), %s161_s26, 4294965248  ;;  %v225_v0 = vld [vmem:[%s923_s1 + $0x78] sm:$0xff]  ;;  %v224_v1 = vld [vmem:[%s923_s1 + $0x70] sm:$0xff]  ;;  %s466_s11 = sshll.u32 %s457_s2, 4  ;;  %s226_s12 = sld [smem:[#allocation2]]  ;;  %vm373_vm0 = vcmask 31744  }
  0x32   : > { %503 = vmatprep.subr.mxu0 %v225_v0  ;;  %559 = vmatprep.subr.mxu1 %v225_v0  ;;  %v223_v2 = vld [vmem:[%s923_s1 + $0x68] sm:$0xff]  ;;  %v222_v3 = vld [vmem:[%s923_s1 + $0x60] sm:$0xff]  ;;  %v221_v4 = vld [vmem:[%s923_s1 + $0x58] sm:$0xff]  ;;  %p189_p8 = scmp.lt.s32.totalorder %s466_s11, 63 }
  0x33   : > { %504 = vmatpush3.msra.mxu0 %v225_v0  ;;  %575 = vmatpush3.msra.mxu1 %v225_v0  ;;  %v220_v5 = vld [vmem:[%s923_s1 + $0x50] sm:$0xff]  ;;  %v219_v6 = vld [vmem:[%s923_s1 + $0x48] sm:$0xff]  ;;  %v218_v7 = vld [vmem:[%s923_s1 + $0x40] sm:$0xff] }
  0x34   : > { %505 = vmatprep.subr.mxu0 %v224_v1  ;;  %560 = vmatprep.subr.mxu1 %v224_v1  ;;  %v217_v8 = vld [vmem:[%s923_s1 + $0x38] sm:$0xff]  ;;  %v216_v9 = vld [vmem:[%s923_s1 + $0x30] sm:$0xff]  ;;  %v215_v10 = vld [vmem:[%s923_s1 + $0x28] sm:$0xff]  ;;  %s936_s11 = smov (!%p189_p8, %s466_s11), 63 }
  0x35   : > { %506 = vmatpush3.msra.mxu0 %v224_v1  ;;  %576 = vmatpush3.msra.mxu1 %v224_v1  ;;  %v214_v11 = vld [vmem:[%s923_s1 + $0x20] sm:$0xff]  ;;  %v213_v12 = vld [vmem:[%s923_s1 + $0x18] sm:$0xff]  ;;  %v212_v13 = vld [vmem:[%s923_s1 + $0x10] sm:$0xff]  ;;  %s467_s13 = sshll.u32 %s936_s11, 3 }
  0x36   : > { %507 = vmatprep.subr.mxu0 %v223_v2  ;;  %561 = vmatprep.subr.mxu1 %v223_v2  ;;  %v211_v14 = vld [vmem:[%s923_s1 + $0x8] sm:$0xff]  ;;  %v210_v15 = vld [vmem:[%s923_s1] sm:$0xff]  ;;  %v196_v20 = vld [vmem:[%s800_s27 + $0x10] sm:$0xff]  ;;  %s875_s20 = scalar_lea.vmem %s925_s3, %s467_s13 }
  0x37   : > { %508 = vmatpush3.msra.mxu0 %v223_v2  ;;  %577 = vmatpush3.msra.mxu1 %v223_v2  ;;  %v194_v16 = vld [vmem:[%s800_s27] sm:$0xff]  ;;  %v195_v18 = vld [vmem:[%s800_s27 + $0x8] sm:$0xff]  ;;  %v204_v21 = vld [vmem:[%s800_s27 + $0x50] sm:$0xff]  ;;  %v227_v32 = vstv %s226_s12 }
  0x38   : > { %509 = vmatprep.subr.mxu0 %v222_v3  ;;  %562 = vmatprep.subr.mxu1 %v222_v3  ;;  %v202_v17 = vld [vmem:[%s800_s27 + $0x40] sm:$0xff]  ;;  %v203_v19 = vld [vmem:[%s800_s27 + $0x48] sm:$0xff]  ;;  %v197_v22 = vld [vmem:[%s800_s27 + $0x18] sm:$0xff] }
  0x39   : > { %510 = vmatpush3.msra.mxu0 %v222_v3  ;;  %578 = vmatpush3.msra.mxu1 %v222_v3  ;;  %v205_v23 = vld [vmem:[%s800_s27 + $0x58] sm:$0xff]  ;;  %v198_v24 = vld [vmem:[%s800_s27 + $0x20] sm:$0xff]  ;;  %v199_v26 = vld [vmem:[%s800_s27 + $0x28] sm:$0xff] }
  0x3a   : > { %511 = vmatprep.subr.mxu0 %v221_v4  ;;  %563 = vmatprep.subr.mxu1 %v221_v4  ;;  %v206_v25 = vld [vmem:[%s800_s27 + $0x60] sm:$0xff]  ;;  %v207_v27 = vld [vmem:[%s800_s27 + $0x68] sm:$0xff]  ;;  %v200_v28 = vld [vmem:[%s800_s27 + $0x30] sm:$0xff] }
  0x3b   : > { %512 = vmatpush3.msra.mxu0 %v221_v4  ;;  %579 = vmatpush3.msra.mxu1 %v221_v4  ;;  %v208_v29 = vld [vmem:[%s800_s27 + $0x70] sm:$0xff]  ;;  %v201_v30 = vld [vmem:[%s800_s27 + $0x38] sm:$0xff] }
  0x3c   : > { %513 = vmatprep.subr.mxu0 %v220_v5  ;;  %564 = vmatprep.subr.mxu1 %v220_v5  ;;  %v209_v31 = vld [vmem:[%s800_s27 + $0x78] sm:$0xff] }
  0x3d   : > { %514 = vmatpush3.msra.mxu0 %v220_v5  ;;  %580 = vmatpush3.msra.mxu1 %v220_v5 }
  0x3e   : > { %515 = vmatprep.subr.mxu0 %v219_v6  ;;  %565 = vmatprep.subr.mxu1 %v219_v6 }
  0x3f   : > { %516 = vmatpush3.msra.mxu0 %v219_v6  ;;  %581 = vmatpush3.msra.mxu1 %v219_v6 }
  0x40   : > { %517 = vmatprep.subr.mxu0 %v218_v7  ;;  %566 = vmatprep.subr.mxu1 %v218_v7 }
  0x41   : > { %518 = vmatpush3.msra.mxu0 %v218_v7  ;;  %582 = vmatpush3.msra.mxu1 %v218_v7 }
  0x42   : > { %519 = vmatprep.subr.mxu0 %v217_v8  ;;  %567 = vmatprep.subr.mxu1 %v217_v8 }
  0x43   : > { %520 = vmatpush3.msra.mxu0 %v217_v8  ;;  %583 = vmatpush3.msra.mxu1 %v217_v8 }
  0x44   : > { %521 = vmatprep.subr.mxu0 %v216_v9  ;;  %568 = vmatprep.subr.mxu1 %v216_v9 }
  0x45   : > { %522 = vmatpush3.msra.mxu0 %v216_v9  ;;  %584 = vmatpush3.msra.mxu1 %v216_v9 }
  0x46   : > { %523 = vmatprep.subr.mxu0 %v215_v10  ;;  %569 = vmatprep.subr.mxu1 %v215_v10 }
  0x47   : > { %524 = vmatpush3.msra.mxu0 %v215_v10  ;;  %585 = vmatpush3.msra.mxu1 %v215_v10 }
  0x48   : > { %525 = vmatprep.subr.mxu0 %v214_v11  ;;  %570 = vmatprep.subr.mxu1 %v214_v11 }
  0x49   : > { %526 = vmatpush3.msra.mxu0 %v214_v11  ;;  %586 = vmatpush3.msra.mxu1 %v214_v11 }
  0x4a   : > { %527 = vmatprep.subr.mxu0 %v213_v12  ;;  %571 = vmatprep.subr.mxu1 %v213_v12 }
  0x4b   : > { %528 = vmatpush3.msra.mxu0 %v213_v12  ;;  %587 = vmatpush3.msra.mxu1 %v213_v12 }
  0x4c   : > { %529 = vmatprep.subr.mxu0 %v212_v13  ;;  %572 = vmatprep.subr.mxu1 %v212_v13 }
  0x4d   : > { %530 = vmatpush3.msra.mxu0 %v212_v13  ;;  %588 = vmatpush3.msra.mxu1 %v212_v13 }
  0x4e   : > { %531 = vmatprep.subr.mxu0 %v211_v14  ;;  %573 = vmatprep.subr.mxu1 %v211_v14 }
  0x4f   : > { %532 = vmatpush3.msra.mxu0 %v211_v14  ;;  %589 = vmatpush3.msra.mxu1 %v211_v14 }
  0x50   : > { %533 = vmatprep.subr.mxu0 %v210_v15  ;;  %574 = vmatprep.subr.mxu1 %v210_v15 }
  0x51   : > { %534 = vmatpush3.msra.mxu0 %v210_v15  ;;  %590 = vmatpush3.msra.mxu1 %v210_v15 }
  0x52   : > { %535 = vmatprep.mubr.f32.mxu0 %v194_v16  ;;  %547 = vmatprep.mubr.f32.mxu1 %v202_v17 }
  0x53   : > { %536 = vmatmul.mubr.f32.vlgmr.msra.gmra.mxu0 %v195_v18  ;;  %548 = vmatmul.mubr.f32.vlgmr.msra.gmra.mxu1 %v203_v19 }
  0x54   : > { %538 = vmatprep.mubr.f32.mxu0 %v196_v20  ;;  %550 = vmatprep.mubr.f32.mxu1 %v204_v21 }
  0x57   : > { %539 = vmatmul.mubr.f32.gmra.mxu0 %v197_v22  ;;  %551 = vmatmul.mubr.f32.gmra.mxu1 %v205_v23 }
  0x58   : > { %541 = vmatprep.mubr.f32.mxu0 %v198_v24  ;;  %553 = vmatprep.mubr.f32.mxu1 %v206_v25 }
  0x5b   : > { %542 = vmatmul.mubr.f32.gmra.mxu0 %v199_v26  ;;  %554 = vmatmul.mubr.f32.gmra.mxu1 %v207_v27 }
  0x5c   : > { %544 = vmatprep.mubr.f32.mxu0 %v200_v28  ;;  %556 = vmatprep.mubr.f32.mxu1 %v208_v29 }
  0x5f   : > { %545 = vmatmul.mubr.f32.gmra.mxu0 %v201_v30  ;;  %557 = vmatmul.mubr.f32.gmra.mxu1 %v209_v31 }
 0x113   : > { %v537_v33 = vpop.f32.mrf.mxu0  ;;  %v549_v34 = vpop.f32.mrf.mxu1 }
 0x114   : > { %v300_v35 = vadd.f32 %v537_v33, %v227_v32  ;;  %v340_v36 = vadd.f32 %v549_v34, %v227_v32 }
 0x115   : > { %v294_v37 = vpop.f32.mrf.mxu0  ;;  %v334_v38 = vpop.f32.mrf.mxu1 }
 0x116   : > { %375 = vst.msk [vmem:[%s875_s20 + $0x8] sm:$0xff] %vm373_vm0, %v300_v35  ;;  %383 = vst.msk [vmem:[%s875_s20 + $0x48] sm:$0xff] %vm373_vm0, %v340_v36  ;;  %v295_v39 = vadd.f32 %v294_v37, %v227_v32  ;;  %v335_v40 = vadd.f32 %v334_v38, %v227_v32 }
 0x117   : > { %v540_v41 = vpop.f32.mrf.mxu0  ;;  %v552_v42 = vpop.f32.mrf.mxu1 }
 0x118   : > { %374 = vst.msk [vmem:[%s875_s20] sm:$0xff] %vm373_vm0, %v295_v39  ;;  %382 = vst.msk [vmem:[%s875_s20 + $0x40] sm:$0xff] %vm373_vm0, %v335_v40  ;;  %v310_v43 = vadd.f32 %v540_v41, %v227_v32  ;;  %v350_v44 = vadd.f32 %v552_v42, %v227_v32 }
 0x119   : > { %v304_v45 = vpop.f32.mrf.mxu0  ;;  %v344_v46 = vpop.f32.mrf.mxu1 }
 0x11a   : > { %377 = vst.msk [vmem:[%s875_s20 + $0x18] sm:$0xff] %vm373_vm0, %v310_v43  ;;  %385 = vst.msk [vmem:[%s875_s20 + $0x58] sm:$0xff] %vm373_vm0, %v350_v44  ;;  %v305_v47 = vadd.f32 %v304_v45, %v227_v32  ;;  %v345_v48 = vadd.f32 %v344_v46, %v227_v32 }
 0x11b   : > { %v543_v49 = vpop.f32.mrf.mxu0  ;;  %v555_v50 = vpop.f32.mrf.mxu1 }
 0x11c   : > { %376 = vst.msk [vmem:[%s875_s20 + $0x10] sm:$0xff] %vm373_vm0, %v305_v47  ;;  %384 = vst.msk [vmem:[%s875_s20 + $0x50] sm:$0xff] %vm373_vm0, %v345_v48  ;;  %v320_v51 = vadd.f32 %v543_v49, %v227_v32  ;;  %v360_v52 = vadd.f32 %v555_v50, %v227_v32 }
 0x11d   : > { %v314_v53 = vpop.f32.mrf.mxu0  ;;  %v354_v54 = vpop.f32.mrf.mxu1 }
 0x11e   : > { %379 = vst.msk [vmem:[%s875_s20 + $0x28] sm:$0xff] %vm373_vm0, %v320_v51  ;;  %387 = vst.msk [vmem:[%s875_s20 + $0x68] sm:$0xff] %vm373_vm0, %v360_v52  ;;  %v315_v55 = vadd.f32 %v314_v53, %v227_v32  ;;  %v355_v56 = vadd.f32 %v354_v54, %v227_v32 }
 0x11f   : > { %v546_v57 = vpop.f32.mrf.mxu0  ;;  %v558_v58 = vpop.f32.mrf.mxu1 }
 0x120   : > { %378 = vst.msk [vmem:[%s875_s20 + $0x20] sm:$0xff] %vm373_vm0, %v315_v55  ;;  %386 = vst.msk [vmem:[%s875_s20 + $0x60] sm:$0xff] %vm373_vm0, %v355_v56  ;;  %v330_v59 = vadd.f32 %v546_v57, %v227_v32  ;;  %v370_v60 = vadd.f32 %v558_v58, %v227_v32 }
 0x121   : > { %v324_v61 = vpop.f32.mrf.mxu0  ;;  %v364_v62 = vpop.f32.mrf.mxu1 }
 0x122   : > { %381 = vst.msk [vmem:[%s875_s20 + $0x38] sm:$0xff] %vm373_vm0, %v330_v59  ;;  %389 = vst.msk [vmem:[%s875_s20 + $0x78] sm:$0xff] %vm373_vm0, %v370_v60  ;;  %v325_v63 = vadd.f32 %v324_v61, %v227_v32  ;;  %v365_v0 = vadd.f32 %v364_v62, %v227_v32 }
 0x124   : > { %380 = vst.msk [vmem:[%s875_s20 + $0x30] sm:$0xff] %vm373_vm0, %v325_v63  ;;  %388 = vst.msk [vmem:[%s875_s20 + $0x70] sm:$0xff] %vm373_vm0, %v365_v0 }
 0x125 PF: > { %p14_p9 = scmp.ge.s32.totalorder %s742_s18, 6   ;;  %s931_s14 = smov %s686_s15 }
 0x126   : > { %s932_s15 = smov %s690_s16  ;;  %s933_s16 = smov %s752_s21 }
 0x127   : > { %s934_s17 = smov %s742_s18  ;;  %16 = sbr.rel (!%p14_p9) target bundleno = 5 (0x5), region = 72 }
 0x12c   :  { %412 = vsyncpa [#allocation4], 1 }
 0x12d   :  { %414 = vsyncpa [#allocation4 + $0x1], 1 }

</bundles_post_ra>
